<compile_context>
chip_gen: v7x
topology: tpu7x:2x2x1
jax: 0.10.0
libtpu: 0.0.40
codegen_flags: <defaults>
</compile_context>

<pallas_src>
import jax
import jax.numpy as jnp
from jax.experimental import pallas as pl
from jax.experimental.pallas import tpu as pltpu

# ---- utils.* constants (small, consistent with the module) -----------------
IMG_SIZE = 16
PATCH_SIZE = 4
IMG_CHANNELS = 4
EMBED_DIM = 32

NUM_PATCHES = (IMG_SIZE // PATCH_SIZE) * (IMG_SIZE // PATCH_SIZE)      # 16
FLATT_DIM = PATCH_SIZE * PATCH_SIZE * IMG_CHANNELS                     # 64


# ---- Pallas kernel ----------------------------------------------------------
def patch_embed_kernel(patches_ref, w_ref, add_ref, out_ref):
    # patches_ref: (TILE_M, F)  bf16   -- TILE_M rows of flattened patches
    # w_ref:       (F, E)       bf16   -- linear projection weight
    # add_ref:     (N, E)       f32    -- bias + pos_embedding rows 1..N
    # out_ref:     (TILE_M, E)  f32
    proj = jnp.dot(
        patches_ref[...], w_ref[...], preferred_element_type=jnp.float32
    )                                                   # (TILE_M, E), f32 acc

    # TILE_M is a static multiple of N, so (bias + pos) repeats cleanly.
    reps = out_ref.shape[0] // add_ref.shape[0]
    proj = proj + jnp.tile(add_ref[...], (reps, 1))

    out_ref[...] = proj.astype(out_ref.dtype)           # one aligned full store


def _choose_tile_m(M, N, target_rows=512):
    """Pick a tile that is a multiple of N (hence of 8), caps at target_rows,
    and leaves at least 2 grid steps whenever possible (megacore)."""
    if M >= 2 * N:
        tile_m = min(target_rows, (M // (2 * N)) * N)
        tile_m = max(tile_m, N)
    else:
        tile_m = N
    return tile_m


def patch_embedding(x, w, b, cls_token, pos_embedding):
    """x: [B, C, H, W] (NCHW, like PyTorch). Returns [B, NUM_PATCHES+1, EMBED_DIM]."""
    B, C, H, W = x.shape
    P = PATCH_SIZE
    h, wg = H // P, W // P
    N = h * wg
    F = P * P * C
    E = w.shape[1]

    # einops: 'b c (h h1) (w w1) -> b (h w) (h1 w1 c)'  (plain-JAX glue).
    # TODO(synk): fuse this transpose into the pallas_call input path
    # (allow_input_fusion / in-kernel stripe reorder) to avoid the extra HBM
    # round-trip; left to XLA here for robustness.
    patches = x.reshape(B, C, h, P, wg, P)
    patches = jnp.transpose(patches, (0, 2, 4, 3, 5, 1)).reshape(B * N, F)

    # Fold B*N into one matmul M dimension and tile it.
    M = B * N
    tile_m = _choose_tile_m(M, N)
    grid_m = pl.cdiv(M, tile_m)
    M_pad = grid_m * tile_m
    if M_pad != M:
        patches = jnp.pad(patches, ((0, M_pad - M), (0, 0)))

    # bf16 operands for the MXU; accumulation stays f32 in the kernel.
    patches_bf16 = patches.astype(jnp.bfloat16)
    w_bf16 = w.astype(jnp.bfloat16)

    # Fold bias into the per-patch positional rows (one tiny f32 add, hoisted
    # out of the kernel entirely).
    add_term = (b + pos_embedding[0, 1:, :]).astype(jnp.float32)   # (N, E)

    proj = pl.pallas_call(
        patch_embed_kernel,
        out_shape=jax.ShapeDtypeStruct((M_pad, E), jnp.float32),
        grid_spec=pltpu.PrefetchScalarGridSpec(
            num_scalar_prefetch=0,
            grid=(grid_m,),
            in_specs=[
                pl.BlockSpec((tile_m, F), lambda i: (i, 0)),   # patches tile
                pl.BlockSpec((F, E), lambda i: (0, 0)),        # weight (invariant)
                pl.BlockSpec((N, E), lambda i: (0, 0)),        # bias+pos (invariant)
            ],
            out_specs=pl.BlockSpec((tile_m, E), lambda i: (i, 0)),
        ),
        compiler_params=pltpu.CompilerParams(
            dimension_semantics=("parallel",)
        ),
    )(patches_bf16, w_bf16, add_term)

    proj = proj[:M].reshape(B, N, E)                     # drop padded rows

    # cls row is batch-invariant: compute once and broadcast in the wrapper.
    cls_row = (cls_token + pos_embedding[:, :1, :])      # (1, 1, E)
    cls_rows = jnp.broadcast_to(cls_row, (B, 1, E))
    return jnp.concatenate([cls_rows, proj], axis=1)     # (B, N+1, E)


# ---- pure-JAX references for sanity checks ----------------------------------
def _rearrange(x):
    B, C, H, W = x.shape
    P = PATCH_SIZE
    h, wg = H // P, W // P
    patches = x.reshape(B, C, h, P, wg, P)
    return jnp.transpose(patches, (0, 2, 4, 3, 5, 1)).reshape(B, h * wg, P * P * C)


def patch_embedding_ref_f32(x, w, b, cls_token, pos_embedding):
    patches = _rearrange(x)
    proj = patches @ w + b                                   # (B, N, E)
    B = x.shape[0]
    cls = jnp.broadcast_to(cls_token, (B, 1, w.shape[1]))
    out = jnp.concatenate([cls, proj], axis=1)
    return out + pos_embedding


def patch_embedding_ref_bf16(x, w, b, cls_token, pos_embedding):
    # Same bf16 operand rounding as the kernel (f32 accumulation).
    patches = _rearrange(x).astype(jnp.bfloat16)
    proj = jnp.einsum(
        "bnf,fe->bne", patches, w.astype(jnp.bfloat16),
        preferred_element_type=jnp.float32) + b
    B = x.shape[0]
    cls = jnp.broadcast_to(cls_token, (B, 1, w.shape[1]))
    out = jnp.concatenate([cls, proj], axis=1)
    return out + pos_embedding


if __name__ == "__main__":
    key = jax.random.PRNGKey(0)
    kx, kw, kb, kc, kp = jax.random.split(key, 5)

    B = 2
    x = jax.random.normal(kx, (B, IMG_CHANNELS, IMG_SIZE, IMG_SIZE), dtype=jnp.float32)

    # nn.Linear(FLATT_DIM, EMBED_DIM) parameters (deterministic init in-script)
    bound = 1.0 / (FLATT_DIM ** 0.5)
    w = jax.random.uniform(kw, (FLATT_DIM, EMBED_DIM), jnp.float32, -bound, bound)
    b = jax.random.uniform(kb, (1, EMBED_DIM), jnp.float32, -bound, bound)

    cls_token = jax.random.normal(kc, (1, 1, EMBED_DIM), dtype=jnp.float32)
    pos_embedding = jax.random.normal(kp, (1, NUM_PATCHES + 1, EMBED_DIM), dtype=jnp.float32)

    out = patch_embedding(x, w, b, cls_token, pos_embedding)
    out = jax.block_until_ready(out)

    assert out.shape == (B, NUM_PATCHES + 1, EMBED_DIM)

    # tight check vs. a reference with matching bf16 operand rounding
    ref_bf16 = patch_embedding_ref_bf16(x, w, b, cls_token, pos_embedding)
    assert jnp.allclose(out, ref_bf16, atol=2e-3, rtol=2e-3)

    # loose check vs. the full-f32 module semantics (bf16 cast error only)
    ref_f32 = patch_embedding_ref_f32(x, w, b, cls_token, pos_embedding)
    assert jnp.allclose(out, ref_f32, atol=5e-2, rtol=5e-2)

    print("KERNEL_OK")
</pallas_src>

<mosaic_0001>
module attributes {stable_mosaic.version = 11 : i64} {
  func.func @patch_embed_kernel(%arg0: i32, %arg1: memref<16x64xbf16, #tpu.memory_space<vmem>>, %arg2: memref<64x32xbf16, #tpu.memory_space<vmem>>, %arg3: memref<16x32xf32, #tpu.memory_space<vmem>>, %arg4: memref<16x32xf32, #tpu.memory_space<vmem>>) attributes {dimension_semantics = [#tpu.dimension_semantics<parallel>], iteration_bounds = array<i64: 2>, scalar_prefetch = 0 : i64, scratch_operands = 0 : i64, tpu.core_type = #tpu.core_type<tc>, window_params = [{transform_indices = @transform_0, window_bounds = array<i64: 16, 64>}, {pipeline_mode = #tpu.pipeline_mode<synchronous>, transform_indices = @transform_1, window_bounds = array<i64: 64, 32>}, {pipeline_mode = #tpu.pipeline_mode<synchronous>, transform_indices = @transform_2, window_bounds = array<i64: 16, 32>}, {transform_indices = @transform_3, window_bounds = array<i64: 16, 32>}]} {
    %c0 = arith.constant 0 : index
    %c0_0 = arith.constant 0 : index
    %0 = vector.load %arg1[%c0, %c0_0] : memref<16x64xbf16, #tpu.memory_space<vmem>>, vector<16x64xbf16>
    %c0_1 = arith.constant 0 : index
    %c0_2 = arith.constant 0 : index
    %1 = vector.load %arg2[%c0_1, %c0_2] : memref<64x32xbf16, #tpu.memory_space<vmem>>, vector<64x32xbf16>
    %cst = arith.constant dense<0.000000e+00> : vector<16x32xf32>
    %2 = tpu.matmul %0, %1, %cst {dimension_numbers = #tpu.dot_dimension_numbers<[1], [0], [0], [1], [0, 0, 1, 1], [], []>} : vector<16x64xbf16>, vector<64x32xbf16>, vector<16x32xf32> -> vector<16x32xf32>
    %c0_3 = arith.constant 0 : index
    %c0_4 = arith.constant 0 : index
    %3 = vector.load %arg3[%c0_3, %c0_4] : memref<16x32xf32, #tpu.memory_space<vmem>>, vector<16x32xf32>
    %4 = arith.addf %2, %3 : vector<16x32xf32>
    %c0_5 = arith.constant 0 : index
    %c0_6 = arith.constant 0 : index
    %5 = vector.load %arg4[%c0_5, %c0_6] : memref<16x32xf32, #tpu.memory_space<vmem>>, vector<16x32xf32>
    tpu.vector_store %arg4[%c0_5, %c0_6], %4 {strides = array<i32>} : memref<16x32xf32, #tpu.memory_space<vmem>>, vector<16x32xf32>,
    return
  }
  func.func @transform_0(%arg0: i32) -> (i32, i32) {
    %c0_i32 = arith.constant 0 : i32
    %c0_i32_0 = arith.constant 0 : i32
    return %arg0, %c0_i32 : i32, i32
  }
  func.func @transform_1(%arg0: i32) -> (i32, i32) {
    %c0_i32 = arith.constant 0 : i32
    %c0_i32_0 = arith.constant 0 : i32
    %c0_i32_1 = arith.constant 0 : i32
    return %c0_i32, %c0_i32_0 : i32, i32
  }
  func.func @transform_2(%arg0: i32) -> (i32, i32) {
    %c0_i32 = arith.constant 0 : i32
    %c0_i32_0 = arith.constant 0 : i32
    %c0_i32_1 = arith.constant 0 : i32
    return %c0_i32, %c0_i32_0 : i32, i32
  }
  func.func @transform_3(%arg0: i32) -> (i32, i32) {
    %c0_i32 = arith.constant 0 : i32
    %c0_i32_0 = arith.constant 0 : i32
    return %arg0, %c0_i32 : i32, i32
  }
}

</mosaic_0001>

<bundles_post_ra>
// kernel: tpu_custom_call.1
= control target key start
LH: loop header
LB: loop body
LE: loop exit
PB: predicated region body
PF: predicated region fallthrough
CT: control target
= control target key end

     0   :  { %8 = vsyncpa [#allocation3], 0  ;;  %s631_s0 = inlined_call_operand.vmem [shape: bf16[32,64], index: 0, kind: input, shape index: {}]   ;;  %s632_s1 = inlined_call_operand.vmem [shape: bf16[64,32], index: 1, kind: input, shape index: {}]   ;;  %s633_s2 = inlined_call_operand.vmem [shape: f32[16,32], index: 2, kind: input, shape index: {}]   ;;  %s634_s3 = inlined_call_operand.hbm [shape: f32[32,32], index: 3, kind: output, shape index: {}]  }
   0x1   :  { %10 = vsyncpa [#allocation3 + $0x1], 0  ;;  %s511_s12 = smov 0   ;;  %s513_s13 = smov 0  }
   0x2   :  { %s515_s14 = smov 0   ;;  %s517_s15 = smov 0  }
   0x3 LB: > { %s532_s16 = sadd.s32 4294967295, %s484_s15   ;;  %s338_s17 = sadd.s32 4294967294, %s484_s15   ;;  %s484_s15 = sphi %s517_s15, %s640_s15   ;;  %s480_s14 = sphi %s515_s14, %s639_s14   ;;  %s476_s13 = sphi %s513_s13, %s638_s13   ;;  %s472_s12 = sphi %s511_s12, %s637_s12  }
   0x4   : > { %s536_s18 = sadd.s32 1, %s484_s15   ;;  %s91_s19 = sadd.s32 1, %s480_s14 }
   0x5   : > { %s88_s20 = ssub.s32 %s484_s15, %s536_s18  ;;  %p101_p0 = scmp.ne.s32.totalorder %s480_s14, %s476_s13 }
   0x6   : > { %p89_p1 = scmp.eq.s32.totalorder %s88_s20, 0  ;;  %p102_p2 = scmp.eq.s32.totalorder %s532_s16, 1 }
   0x7   : > { %p107_p3 = scmp.ne.s32.totalorder %s476_s13, %s472_s12  ;;  %p108_p4 = scmp.eq.s32.totalorder %s338_s17, 1 }
   0x8   : > { %s547_s21 = scalar_select %p89_p1, %s480_s14, %s91_s19  }
   0x9   : > { %p549_p5 = por %p102_p2, %p101_p0  ;;  %p553_p6 = por %p108_p4, %p107_p3 }
   0xa   : > { %p341_p7 = scmp.ge.s32.totalorder %s484_s15, 1  ;;  %p141_p8 = scmp.lt.s32.totalorder %s484_s15, 3 }
   0xc   : > { %p142_p9 = pnand %p341_p7, %p141_p8 }
   0xd   : > { %v417_v0 = vld [vmem:[%s632_s1] sm:$0xff] (!%p142_p9)   ;;  %v486_v1 = vmov (!%p142_p9), 0.0   ;;  %v418_v2 = vld [vmem:[%s632_s1 + $0x8] sm:$0xff] (!%p142_p9)   ;;  %vm487_vm0 = vmmov (!%p142_p9), 0   ;;  %s343_s28 = sshll.u32 (!%p142_p9), %s532_s16, 1  ;;  %v419_v3 = vld [vmem:[%s632_s1 + $0x10] sm:$0xff] (!%p142_p9)  }
   0xe   : > { %145 = sbr.rel (%p142_p9) target bundleno = 261 (0x105), region = 32  ;;  %362 = vmatprep.subr.bf16.mxu0 (!%p142_p9), %v486_v1  ;;  %370 = vmatprep.mubr.msk.bf16.mxu0 (!%p142_p9), %vm487_vm0, %v486_v1  ;;  %p166_p10 = scmp.lt.s32.totalorder (!%p142_p9), %s343_s28, 3  ;;  %v420_v4 = vld [vmem:[%s632_s1 + $0x18] sm:$0xff] (!%p142_p9)   ;;  %vm214_vm1 = vcmask (!%p142_p9), 523264   ;;  %v183_v6 = vld [vmem:[%s633_s2] sm:$0xff] (!%p142_p9)  ;;  %vm259_vm2 = vcmask (!%p142_p9), 261120  }
   0xf   : > { %363 = vmatpush3.bf16.msra.mxu0 (!%p142_p9), %v417_v0  ;;  %s162_s10 = sand.u32 (!%p142_p9), 1, %s476_s13   ;;  %s356_s25 = sshll.u32 (!%p142_p9), %s532_s16, 8  ;;  %v184_v8 = vld [vmem:[%s633_s2 + $0x8] sm:$0xff] (!%p142_p9) }
  0x10   : > { %364 = vmatprep.subr.bf16.mxu0 (!%p142_p9), %v486_v1  ;;  %s342_s11 = sshll.u32 (!%p142_p9), %s162_s10, 4  ;;  %s588_s30 = scalar_lea.hbm (!%p142_p9), %s634_s3, %s356_s25 }
  0x11   : > { %s164_s20 = scalar_lea.vmem (!%p142_p9), [#allocation2], %s342_s11  ;;  %s590_s16 = scalar_lea.sflag (!%p142_p9), [#allocation3], %s162_s10 }
  0x12   : > { %s276_s24 = sshll.u32 (!%p142_p9), %s164_s20, 4  ;;  %s488_s5 = smov (!%p142_p9), [#allocation2]   ;;  %s583_s24 = int_to_ptr.vmem [resolvable:$true] %s276_s24 }
  0x13   : > { %365 = vmatpush3.bf16.msra.mxu0 (!%p142_p9), %v418_v2  ;;  %s426_s6 = sshll.u32 (!%p142_p9), %s488_s5, 4  ;;  %s427_s6 = int_to_ptr.vmem [resolvable:$false] %s426_s6 }
  0x14   : > { %366 = vmatprep.subr.bf16.mxu0 (!%p142_p9), %v486_v1  ;;  %p429_p0 = scmp.lt.s32.totalorder (!%p142_p9), %s583_s24, %s427_s6 }
  0x15   : > { %s642_s28 = smov (!%p166_p10, %s343_s28), 3 }
  0x16   : > { %s344_s4 = sshll.u32 %s642_s28, 2 }
  0x17   : > { %s169_s7 = scalar_lea.vmem %s631_s0, %s344_s4  ;;  %367 = vmatpush3.bf16.msra.mxu0 %v419_v3  ;;  %s422_s4 = scalar_lea.vmem %s583_s24, 256 }
  0x18   : > { %368 = vmatprep.subr.bf16.mxu0 %v486_v1  ;;  %v421_v5 = vld [vmem:[%s169_s7] sm:$0xff]   ;;  %p423_p11 = scmp.ne.s32.totalorder %s583_s24, %s422_s4  ;;  %s428_s7 = scalar_lea.vmem %s427_s6, 512 }
  0x19   : > { %p430_p1 = scmp.lt.s32.totalorder %s428_s7, %s422_s4 }
  0x1a   : > { %p424_p12 = pnand %p423_p11, %p549_p5 }
  0x1b   : > { %369 = vmatpush3.bf16.msra.mxu0 %v420_v4  ;;  %p431_p2 = por %p430_p1, %p429_p0 }
  0x1c   : > { %p425_p13 = pneg %p424_p12 }
  0x1e   : > { %371 = vmatmul.mubr.msk.bf16.vlgmr.msra.gmra.mrb[0].mxu0 %vm214_vm1, %v421_v5  ;;  %p432_p3 = pnand %p431_p2, %p425_p13 }
  0xf1   : > { %v252_v7 = vpop.f32.mrb[0].mxu0 }
  0xf2   : > { %v253_v9 = vadd.f32 %v252_v7, %v183_v6  ;;  %v372_v10 = vpop.f32.mrb[1].mxu0 }
  0xf3   : > { %v255_v11 = vpop.f32.mrb[2].mxu0 }
  0xf4   : > { %260 = vst.msk [vmem:[%s164_s20] sm:$0xff] %vm259_vm2, %v253_v9  ;;  %v256_v12 = vadd.f32 %v255_v11, %v184_v8  ;;  %v373_v13 = vpop.f32.mrb[3].mxu0 }
  0xf6   : > { %261 = vst.msk [vmem:[%s164_s20 + $0x8] sm:$0xff] %vm259_vm2, %v256_v12 }
  0xf7   : > { %435 = shalt.err (!%p432_p3)
}
  0xf8   : > { %s436_s8 = scalar_lea.hbm %s588_s30, 256  ;;  %s440_s11 = scalar_lea.hbm %s634_s3, 512 }
  0xf9   : > { %p437_p4 = scmp.ne.s32.totalorder %s588_s30, %s436_s8  ;;  %p441_p9 = scmp.lt.u32.totalorder %s588_s30, %s634_s3 }
  0xfa   : > { %p442_p10 = scmp.lt.u32.totalorder %s440_s11, %s436_s8  ;;  %p444_p12 = scmp.lt.u32.totalorder %s436_s8, %s588_s30 }
  0xfb   : > { %p438_p7 = pnand %p437_p4, %p549_p5 }
  0xfc   : > { %p443_p11 = por %p442_p10, %p441_p9 }
  0xfd   : > { %p439_p8 = pneg %p438_p7 }
  0xfe   : > { %p445_p13 = por %p444_p12, %p443_p11 }
 0x100   : > { %p446_p0 = pnand %p445_p13, %p439_p8 }
 0x102   : > { %449 = shalt.err (!%p446_p0)
}
 0x103   : > { %s489_s20 = smov 128   ;;  %s490_s25 = smov 8  }
 0x104   : > { %374 = dma.vmem_to_hbm [thread:$0]  (%p549_p5), %s583_s24, 256, %s588_s30, %s590_s16, %s489_s20, %s489_s20, %s490_s25  }
 0x105 PF: > { %p380_p1 = scmp.ge.s32.totalorder %s484_s15, 2  ;;  %s291_s26 = sand.u32 1, %s472_s12  }
 0x106   : > { %s292_s27 = scalar_lea.sflag [#allocation3], %s291_s26 }
 0x107   : > { %p377_p2 = pnand %p380_p1, %p553_p6 }
 0x109   : > { %467 = dma.done.wait (!%p377_p2), %s292_s27, 256  }
 0x10a   : > { %469 = vsyncadd (!%p377_p2), %s292_s27, 4294967040  ;;  %p13_p3 = scmp.ge.s32.totalorder %s536_s18, 4   ;;  %s637_s12 = smov %s476_s13 }
 0x10b   : > { %s638_s13 = smov %s480_s14  ;;  %s639_s14 = smov %s547_s21 }
 0x10c   : > { %s640_s15 = smov %s536_s18  ;;  %15 = sbr.rel (!%p13_p3) target bundleno = 3 (0x3), region = 67 }
 0x113   :  { %297 = vsyncpa [#allocation3], 1 }
 0x114   :  { %299 = vsyncpa [#allocation3 + $0x1], 1 }

</bundles_post_ra>
